<compile_context>
chip_gen: v5e
topology: v5e:2x2
jax: 0.10.0
libtpu: 0.0.40
codegen_flags: <defaults>
</compile_context>

<pallas_src>
import functools

import jax
import jax.numpy as jnp
from jax.experimental import pallas as pl
from jax.experimental.pallas import tpu as pltpu

P = 128       # padded / augmented feature dim (covers max(in_dim)+1, max(out_dim))
B_TILE = 128  # lane-dense batch tile


def _make_fcnet_kernel(n_layers):
    """Fused whole-network kernel for one 128-wide batch tile.

    Refs: w_slab (L, P, P)       packed augmented [W | b] matrices (resident)
          x      (P, B_TILE)     augmented input tile (ones row at P-1)
          z      (L, P, B_TILE)  pre-activations of every layer
    """

    def kernel(w_ref, x_ref, z_ref):
        a = x_ref[...]                                        # (P, B_TILE)
        for i in range(n_layers):
            # Bias is folded into column P-1 of W_aug; the ones row of `a`
            # self-propagates because W_aug[P-1, P-1] == 1 and relu(1) == 1.
            z = jnp.dot(w_ref[i], a, preferred_element_type=jnp.float32)
            z_ref[i, :, :] = z
            if i < n_layers - 1:
                a = jnp.maximum(z, 0.0)                       # stays in vregs

    return kernel


def pack_params(ws, bs):
    """Pack all (W_i, b_i) into one (L, P, P) augmented, zero-padded f32 slab."""
    n_layers = len(ws)
    slab = jnp.zeros((n_layers, P, P), jnp.float32)
    for i, (w, b) in enumerate(zip(ws, bs)):
        out_d, in_d = w.shape
        assert out_d < P and in_d < P, "layer dims must fit the 128 pad"
        slab = slab.at[i, :out_d, :in_d].set(w.astype(jnp.float32))
        slab = slab.at[i, :out_d, P - 1].set(b.astype(jnp.float32))
        slab = slab.at[i, P - 1, P - 1].set(1.0)  # propagate the ones row
    return slab


@functools.partial(jax.jit, static_argnums=(1,))
def fcnet_forward(w_slab, out_dims, x):
    """Mirror of FCNet.forward.

    w_slab  : (L, P, P) packed augmented weights (see pack_params)
    out_dims: static tuple of per-layer output dims
    x       : (in_dim, batch) f32 input, layout [dim, batch] as in PyTorch
    Returns (out, zs) with zs = [x, z_1, ..., z_{L-1}] and out = last layer
    (no activation), matching the PyTorch module.
    """
    n_layers = len(out_dims)
    in_dim, batch = x.shape
    n_tiles = -(-batch // B_TILE)
    b_pad = n_tiles * B_TILE

    # Augmented, lane-padded input: real rows, ones row at P-1, zeros elsewhere.
    x_pad = jnp.zeros((P, b_pad), jnp.float32)
    x_pad = x_pad.at[:in_dim, :batch].set(x.astype(jnp.float32))
    x_pad = x_pad.at[P - 1, :].set(1.0)

    z_slab = pl.pallas_call(
        _make_fcnet_kernel(n_layers),
        out_shape=jax.ShapeDtypeStruct((n_layers, P, b_pad), jnp.float32),
        grid_spec=pltpu.PrefetchScalarGridSpec(
            num_scalar_prefetch=0,
            grid=(n_tiles,),
            in_specs=[
                # Whole weight slab; same block every step -> stays resident.
                pl.BlockSpec((n_layers, P, P), lambda i: (0, 0, 0)),
                # One lane-dense batch tile per grid step.
                pl.BlockSpec((P, B_TILE), lambda i: (0, i)),
            ],
            out_specs=pl.BlockSpec((n_layers, P, B_TILE), lambda i: (0, 0, i)),
        ),
        compiler_params=pltpu.CompilerParams(
            # Batch tiles are independent -> shard across TCs on v7x.
            dimension_semantics=("parallel",),
        ),
    )(w_slab, x_pad)

    zs = [x] + [z_slab[i, :out_dims[i], :batch] for i in range(n_layers - 1)]
    out = z_slab[n_layers - 1, :out_dims[-1], :batch]
    return out, zs


def _reference_forward(ws, bs, x):
    zs = [x]
    for i in range(len(ws) - 1):
        x = ws[i] @ x + bs[i][:, None]
        zs.append(x)
        x = jnp.maximum(x, 0.0)
    x = ws[-1] @ x + bs[-1][:, None]
    return x, zs


if __name__ == "__main__":
    key = jax.random.PRNGKey(0)

    # Layer sizes 32 -> 32 -> 16 -> 8; batch 200 (-> 2 lane-dense grid tiles).
    layer_dims = [32, 32, 16, 8]
    batch = 200

    ws, bs = [], []
    for li in range(len(layer_dims) - 1):
        key, kw, kb = jax.random.split(key, 3)
        out_d, in_d = layer_dims[li + 1], layer_dims[li]
        ws.append(jax.random.normal(kw, (out_d, in_d), dtype=jnp.float32) * 0.1)
        bs.append(jax.random.normal(kb, (out_d,), dtype=jnp.float32) * 0.1)

    key, kx = jax.random.split(key)
    x = jax.random.normal(kx, (layer_dims[0], batch), dtype=jnp.float32)

    # One-time packing of weights/biases (hoisted out of the forward path).
    w_slab = pack_params(ws, bs)
    out_dims = tuple(w.shape[0] for w in ws)

    out, zs = fcnet_forward(w_slab, out_dims, x)
    out = jax.block_until_ready(out)
    zs = [jax.block_until_ready(z) for z in zs]

    # Cross-check against a pure-JAX reference of the PyTorch semantics.
    ref_out, ref_zs = _reference_forward(ws, bs, x)
    assert out.shape == (layer_dims[-1], batch)
    assert len(zs) == len(layer_dims) - 1
    # Tolerance documents the bias-fold reassociation under the MXU's default
    # (possibly bf16-pass) matmul precision; measured error is typically ~1e-6.
    assert jnp.allclose(out, ref_out, atol=2e-3, rtol=2e-3)
    for z, rz in zip(zs, ref_zs):
        assert z.shape == rz.shape
        assert jnp.allclose(z, rz, atol=2e-3, rtol=2e-3)

    print("KERNEL_OK")
</pallas_src>

<mosaic_0001>
module attributes {stable_mosaic.version = 11 : i64} {
  func.func @kernel(%arg0: i32, %arg1: memref<3x128x128xf32, #tpu.memory_space<vmem>>, %arg2: memref<128x128xf32, #tpu.memory_space<vmem>>, %arg3: memref<3x128x128xf32, #tpu.memory_space<vmem>>) attributes {dimension_semantics = [#tpu.dimension_semantics<parallel>], iteration_bounds = array<i64: 2>, scalar_prefetch = 0 : i64, scratch_operands = 0 : i64, tpu.core_type = #tpu.core_type<tc>, window_params = [{pipeline_mode = #tpu.pipeline_mode<synchronous>, transform_indices = @transform_0, window_bounds = array<i64: 3, 128, 128>}, {transform_indices = @transform_1, window_bounds = array<i64: 128, 128>}, {transform_indices = @transform_2, window_bounds = array<i64: 3, 128, 128>}]} {
    %c0 = arith.constant 0 : index
    %c0_0 = arith.constant 0 : index
    %0 = vector.load %arg2[%c0, %c0_0] : memref<128x128xf32, #tpu.memory_space<vmem>>, vector<128x128xf32>
    %c0_1 = arith.constant 0 : index
    %c0_2 = arith.constant 0 : index
    %c0_3 = arith.constant 0 : index
    %1 = vector.load %arg1[%c0_1, %c0_2, %c0_3] : memref<3x128x128xf32, #tpu.memory_space<vmem>>, vector<1x128x128xf32>
    %2 = vector.shape_cast %1 : vector<1x128x128xf32> to vector<128x128xf32>
    %cst = arith.constant dense<0.000000e+00> : vector<128x128xf32>
    %3 = tpu.matmul %2, %0, %cst {dimension_numbers = #tpu.dot_dimension_numbers<[1], [0], [0], [1], [0, 0, 1, 1], [], []>} : vector<128x128xf32>, vector<128x128xf32>, vector<128x128xf32> -> vector<128x128xf32>
    %c0_4 = arith.constant 0 : index
    %c0_5 = arith.constant 0 : index
    %c0_6 = arith.constant 0 : index
    %4 = vector.load %arg3[%c0_4, %c0_5, %c0_6] : memref<3x128x128xf32, #tpu.memory_space<vmem>>, vector<1x128x128xf32>
    %5 = vector.shape_cast %4 : vector<1x128x128xf32> to vector<128x128xf32>
    %6 = vector.shape_cast %3 : vector<128x128xf32> to vector<1x128x128xf32>
    tpu.vector_store %arg3[%c0_4, %c0_5, %c0_6], %6 {strides = array<i32>} : memref<3x128x128xf32, #tpu.memory_space<vmem>>, vector<1x128x128xf32>,
    %cst_7 = arith.constant 0.000000e+00 : f32
    %7 = vector.broadcast %cst_7 : f32 to vector<128x128xf32>
    %8 = arith.maximumf %3, %7 : vector<128x128xf32>
    %c1 = arith.constant 1 : index
    %c0_8 = arith.constant 0 : index
    %c0_9 = arith.constant 0 : index
    %9 = vector.load %arg1[%c1, %c0_8, %c0_9] : memref<3x128x128xf32, #tpu.memory_space<vmem>>, vector<1x128x128xf32>
    %10 = vector.shape_cast %9 : vector<1x128x128xf32> to vector<128x128xf32>
    %cst_10 = arith.constant dense<0.000000e+00> : vector<128x128xf32>
    %11 = tpu.matmul %10, %8, %cst_10 {dimension_numbers = #tpu.dot_dimension_numbers<[1], [0], [0], [1], [0, 0, 1, 1], [], []>} : vector<128x128xf32>, vector<128x128xf32>, vector<128x128xf32> -> vector<128x128xf32>
    %c1_11 = arith.constant 1 : index
    %c0_12 = arith.constant 0 : index
    %c0_13 = arith.constant 0 : index
    %12 = vector.load %arg3[%c1_11, %c0_12, %c0_13] : memref<3x128x128xf32, #tpu.memory_space<vmem>>, vector<1x128x128xf32>
    %13 = vector.shape_cast %12 : vector<1x128x128xf32> to vector<128x128xf32>
    %14 = vector.shape_cast %11 : vector<128x128xf32> to vector<1x128x128xf32>
    tpu.vector_store %arg3[%c1_11, %c0_12, %c0_13], %14 {strides = array<i32>} : memref<3x128x128xf32, #tpu.memory_space<vmem>>, vector<1x128x128xf32>,
    %cst_14 = arith.constant 0.000000e+00 : f32
    %15 = vector.broadcast %cst_14 : f32 to vector<128x128xf32>
    %16 = arith.maximumf %11, %15 : vector<128x128xf32>
    %c2 = arith.constant 2 : index
    %c0_15 = arith.constant 0 : index
    %c0_16 = arith.constant 0 : index
    %17 = vector.load %arg1[%c2, %c0_15, %c0_16] : memref<3x128x128xf32, #tpu.memory_space<vmem>>, vector<1x128x128xf32>
    %18 = vector.shape_cast %17 : vector<1x128x128xf32> to vector<128x128xf32>
    %cst_17 = arith.constant dense<0.000000e+00> : vector<128x128xf32>
    %19 = tpu.matmul %18, %16, %cst_17 {dimension_numbers = #tpu.dot_dimension_numbers<[1], [0], [0], [1], [0, 0, 1, 1], [], []>} : vector<128x128xf32>, vector<128x128xf32>, vector<128x128xf32> -> vector<128x128xf32>
    %c2_18 = arith.constant 2 : index
    %c0_19 = arith.constant 0 : index
    %c0_20 = arith.constant 0 : index
    %20 = vector.load %arg3[%c2_18, %c0_19, %c0_20] : memref<3x128x128xf32, #tpu.memory_space<vmem>>, vector<1x128x128xf32>
    %21 = vector.shape_cast %20 : vector<1x128x128xf32> to vector<128x128xf32>
    %22 = vector.shape_cast %19 : vector<128x128xf32> to vector<1x128x128xf32>
    tpu.vector_store %arg3[%c2_18, %c0_19, %c0_20], %22 {strides = array<i32>} : memref<3x128x128xf32, #tpu.memory_space<vmem>>, vector<1x128x128xf32>,
    return
  }
  func.func @transform_0(%arg0: i32) -> (i32, i32, i32) {
    %c0_i32 = arith.constant 0 : i32
    %c0_i32_0 = arith.constant 0 : i32
    %c0_i32_1 = arith.constant 0 : i32
    %c0_i32_2 = arith.constant 0 : i32
    return %c0_i32, %c0_i32_0, %c0_i32_1 : i32, i32, i32
  }
  func.func @transform_1(%arg0: i32) -> (i32, i32) {
    %c0_i32 = arith.constant 0 : i32
    %c0_i32_0 = arith.constant 0 : i32
    return %c0_i32, %arg0 : i32, i32
  }
  func.func @transform_2(%arg0: i32) -> (i32, i32, i32) {
    %c0_i32 = arith.constant 0 : i32
    %c0_i32_0 = arith.constant 0 : i32
    %c0_i32_1 = arith.constant 0 : i32
    return %c0_i32, %c0_i32_0, %arg0 : i32, i32, i32
  }
}

</mosaic_0001>

<bundles_post_ra>
// kernel: fcnet_forward.1
= control target key start
LH: loop header
LB: loop body
LE: loop exit
PB: predicated region body
PF: predicated region fallthrough
CT: control target
= control target key end

     0   :  { %7 = vsyncpa [#allocation3], 0  ;;  %s1098_s9 = smov 0   ;;  %s1100_s10 = smov 0   ;;  %s1394_s0 = inlined_call_operand.hbm [shape: f32[3,128,128], index: 0, kind: input, shape index: {}]   ;;  %s1395_s1 = inlined_call_operand.vmem [shape: f32[128,256], index: 1, kind: input, shape index: {}]   ;;  %s1396_s2 = inlined_call_operand.vmem [shape: f32[3,128,256], index: 2, kind: output, shape index: {}]  }
   0x1   :  { %s1102_s11 = smov 0  }
   0x2 LB: > { %s1114_s12 = sadd.s32 4294967295, %s1078_s11   ;;  %s1117_s13 = sadd.s32 1, %s1078_s11   ;;  %s1078_s11 = sphi %s1102_s11, %s1402_s11   ;;  %s1074_s10 = sphi %s1100_s10, %s1401_s10   ;;  %s1070_s9 = sphi %s1098_s9, %s1400_s9  }
   0x3   : > { %s38_s14 = ssub.s32 %s1078_s11, %s1117_s13  ;;  %s41_s15 = sadd.s32 1, %s1074_s10 }
   0x4   : > { %p39_p0 = scmp.eq.s32.totalorder %s38_s14, 0  ;;  %p48_p1 = scmp.ne.s32.totalorder %s1074_s10, %s1070_s9 }
   0x5   : > { %p49_p2 = scmp.eq.s32.totalorder %s1078_s11, 0  ;;  %p78_p3 = scmp.eq.s32.totalorder %s1114_s12, 1 }
   0x6   : > { %s1127_s16 = scalar_select %p39_p0, %s1074_s10, %s41_s15  }
   0x7   : > { %p1129_p4 = por %p49_p2, %p48_p1  ;;  %p1133_p5 = por %p78_p3, %p48_p1 }
   0x8   : > { %p893_p6 = scmp.ge.s32.totalorder %s1078_s11, 1  ;;  %p91_p7 = scmp.lt.s32.totalorder %s1078_s11, 3 }
   0x9   : > { %p993_p8 = scmp.eq.s32.totalorder %s1114_s12, 0  ;;  %s102_s22 = sshll.u32 %s1394_s0, 4  ;;  %s103_s22 = int_to_ptr.hbm [resolvable:$true] %s102_s22 }
   0xa   : > { %p1140_p9 = pnand %p893_p6, %p91_p7  ;;  %s1080_s23 = smov [#allocation2]  }
   0xb   : > { %s104_s24 = sshll.u32 %s1080_s23, 4  ;;  %s1081_s25 = smov 128   ;;  %s105_s24 = int_to_ptr.vmem [resolvable:$true] %s104_s24 }
   0xc   : > { %p989_p10 = pneg %p1140_p9  ;;  %s1082_s26 = smov 8  }
   0xd   : > { %p895_p12 = scmp.ge.s32.totalorder %s1078_s11, 2 }
   0xe   : > { %p990_p11 = pnand %p993_p8, %p989_p10 }
   0xf   : > { %114 = sbr.rel (%p895_p12) target bundleno = 40 (0x28), region = 20 }
  0x10   : > { %992 = dma.hbm_to_vmem [thread:$0]  (!%p990_p11), %s103_s22, 6144, %s105_s24, [#allocation3], %s1081_s25, %s1081_s25, %s1082_s26  }
  0x14   : > { %117 = sbr.rel (!%p1129_p4) target bundleno = 40 (0x28), region = 24  ;;  %s119_s27 = sand.u32 (%p1129_p4), 1, %s1074_s10  }
  0x15   : > { %s897_s28 = sshll.u32 (%p1129_p4), %s1078_s11, 3  ;;  %s896_s29 = sshll.u32 (%p1129_p4), %s119_s27, 7 }
  0x16   : > { %s1159_s4 = scalar_lea.vmem (%p1129_p4), %s1395_s1, %s897_s28  ;;  %s121_s5 = scalar_lea.vmem (%p1129_p4), [#allocation4], %s896_s29 }
  0x17   : > { %v182_v0 = vld [vmem:[%s1159_s4] sm:$0xff] (%p1129_p4)  ;;  %v184_v1 = vld [vmem:[%s1159_s4 + $0x10] sm:$0xff] (%p1129_p4) }
  0x18   : > { %v186_v2 = vld [vmem:[%s1159_s4 + $0x20] sm:$0xff] (%p1129_p4)  ;;  %183 = vst [vmem:[%s121_s5] sm:$0xff] (%p1129_p4), %v182_v0  ;;  %v188_v3 = vld [vmem:[%s1159_s4 + $0x30] sm:$0xff] (%p1129_p4) }
  0x19   : > { %185 = vst [vmem:[%s121_s5 + $0x8] sm:$0xff] %v184_v1  ;;  %v190_v4 = vld [vmem:[%s1159_s4 + $0x40] sm:$0xff]  ;;  %v192_v5 = vld [vmem:[%s1159_s4 + $0x50] sm:$0xff] }
  0x1a   : > { %187 = vst [vmem:[%s121_s5 + $0x10] sm:$0xff] %v186_v2  ;;  %v194_v6 = vld [vmem:[%s1159_s4 + $0x60] sm:$0xff]  ;;  %v196_v7 = vld [vmem:[%s1159_s4 + $0x70] sm:$0xff] }
  0x1b   : > { %189 = vst [vmem:[%s121_s5 + $0x18] sm:$0xff] %v188_v3  ;;  %v198_v8 = vld [vmem:[%s1159_s4 + $0x80] sm:$0xff]  ;;  %v200_v9 = vld [vmem:[%s1159_s4 + $0x90] sm:$0xff] }
  0x1c   : > { %191 = vst [vmem:[%s121_s5 + $0x20] sm:$0xff] %v190_v4  ;;  %v202_v10 = vld [vmem:[%s1159_s4 + $0xa0] sm:$0xff]  ;;  %v204_v11 = vld [vmem:[%s1159_s4 + $0xb0] sm:$0xff] }
  0x1d   : > { %193 = vst [vmem:[%s121_s5 + $0x28] sm:$0xff] %v192_v5  ;;  %v206_v12 = vld [vmem:[%s1159_s4 + $0xc0] sm:$0xff]  ;;  %v208_v13 = vld [vmem:[%s1159_s4 + $0xd0] sm:$0xff] }
  0x1e   : > { %195 = vst [vmem:[%s121_s5 + $0x30] sm:$0xff] %v194_v6  ;;  %v210_v14 = vld [vmem:[%s1159_s4 + $0xe0] sm:$0xff]  ;;  %v212_v15 = vld [vmem:[%s1159_s4 + $0xf0] sm:$0xff] }
  0x1f   : > { %197 = vst [vmem:[%s121_s5 + $0x38] sm:$0xff] %v196_v7 }
  0x20   : > { %199 = vst [vmem:[%s121_s5 + $0x40] sm:$0xff] %v198_v8 }
  0x21   : > { %201 = vst [vmem:[%s121_s5 + $0x48] sm:$0xff] %v200_v9 }
  0x22   : > { %203 = vst [vmem:[%s121_s5 + $0x50] sm:$0xff] %v202_v10 }
  0x23   : > { %205 = vst [vmem:[%s121_s5 + $0x58] sm:$0xff] %v204_v11 }
  0x24   : > { %207 = vst [vmem:[%s121_s5 + $0x60] sm:$0xff] %v206_v12 }
  0x25   : > { %209 = vst [vmem:[%s121_s5 + $0x68] sm:$0xff] %v208_v13 }
  0x26   : > { %211 = vst [vmem:[%s121_s5 + $0x70] sm:$0xff] %v210_v14 }
  0x27   : > { %213 = vst [vmem:[%s121_s5 + $0x78] sm:$0xff] %v212_v15 }
  0x28 PF: > { %222 = sbr.rel (%p1140_p9) target bundleno = 788 (0x314), region = 62 }
  0x2d   : > { %1065 = dma.done.wait (%p993_p8), [#allocation3], 6144  }
  0x2e   : > { %1067 = vsyncadd (%p993_p8), [#allocation3], 4294961152  ;;  %s230_s6 = sand.u32 1, %s1070_s9   ;;  %v266_v32 = vld [vmem:[#allocation2] sm:$0xff]  ;;  %v267_v34 = vld [vmem:[#allocation2 + $0x8] sm:$0xff]  ;;  %s933_s9 = sshll.u32 (%p1133_p5), %s1114_s12, 3 }
  0x2f   : > { %s900_s7 = sshll.u32 %s230_s6, 7  ;;  %v278_v33 = vld [vmem:[#allocation2 + $0x60] sm:$0xff]  ;;  %v279_v35 = vld [vmem:[#allocation2 + $0x68] sm:$0xff]  ;;  %v268_v36 = vld [vmem:[#allocation2 + $0x10] sm:$0xff]  ;;  %s984_s11 = smul.u32 384, %s230_s6 }
  0x30   : > { %s1186_s8 = scalar_lea.vmem [#allocation4], %s900_s7  ;;  %v280_v37 = vld [vmem:[#allocation2 + $0x70] sm:$0xff]  ;;  %v269_v38 = vld [vmem:[#allocation2 + $0x18] sm:$0xff]  ;;  %v270_v40 = vld [vmem:[#allocation2 + $0x20] sm:$0xff]  ;;  %s1288_s19 = scalar_lea.vmem (%p1133_p5), %s1396_s2, %s933_s9 }
  0x31   : > { %v265_v16 = vld [vmem:[%s1186_s8 + $0x78] sm:$0xff]  ;;  %v264_v17 = vld [vmem:[%s1186_s8 + $0x70] sm:$0xff]  ;;  %v263_v18 = vld [vmem:[%s1186_s8 + $0x68] sm:$0xff]  ;;  %s1208_s14 = scalar_lea.vmem [#allocation5], %s984_s11 }
  0x32   : > { %282 = vmatpush.msra.mxu0 %v265_v16  ;;  %936 = vmatpush.msra.mxu3 %v265_v16  ;;  %v262_v19 = vld [vmem:[%s1186_s8 + $0x60] sm:$0xff]  ;;  %v261_v20 = vld [vmem:[%s1186_s8 + $0x58] sm:$0xff]  ;;  %v260_v21 = vld [vmem:[%s1186_s8 + $0x50] sm:$0xff] }
  0x33   : > { %v259_v22 = vld [vmem:[%s1186_s8 + $0x48] sm:$0xff]  ;;  %v258_v23 = vld [vmem:[%s1186_s8 + $0x40] sm:$0xff]  ;;  %v257_v24 = vld [vmem:[%s1186_s8 + $0x38] sm:$0xff] }
  0x34   : > { %283 = vmatpush.msra.mxu0 %v264_v17  ;;  %937 = vmatpush.msra.mxu3 %v264_v17  ;;  %v256_v25 = vld [vmem:[%s1186_s8 + $0x30] sm:$0xff]  ;;  %v255_v26 = vld [vmem:[%s1186_s8 + $0x28] sm:$0xff]  ;;  %v254_v27 = vld [vmem:[%s1186_s8 + $0x20] sm:$0xff] }
  0x35   : > { %v253_v28 = vld [vmem:[%s1186_s8 + $0x18] sm:$0xff]  ;;  %v252_v29 = vld [vmem:[%s1186_s8 + $0x10] sm:$0xff]  ;;  %v251_v30 = vld [vmem:[%s1186_s8 + $0x8] sm:$0xff] }
  0x36   : > { %284 = vmatpush.msra.mxu0 %v263_v18  ;;  %938 = vmatpush.msra.mxu3 %v263_v18  ;;  %v250_v31 = vld [vmem:[%s1186_s8] sm:$0xff]  ;;  %v281_v39 = vld [vmem:[#allocation2 + $0x78] sm:$0xff]  ;;  %v271_v41 = vld [vmem:[#allocation2 + $0x28] sm:$0xff] }
  0x37   : > { %v272_v42 = vld [vmem:[#allocation2 + $0x30] sm:$0xff]  ;;  %v273_v43 = vld [vmem:[#allocation2 + $0x38] sm:$0xff]  ;;  %v274_v44 = vld [vmem:[#allocation2 + $0x40] sm:$0xff] }
  0x38   : > { %285 = vmatpush.msra.mxu0 %v262_v19  ;;  %939 = vmatpush.msra.mxu3 %v262_v19  ;;  %v275_v45 = vld [vmem:[#allocation2 + $0x48] sm:$0xff]  ;;  %v276_v46 = vld [vmem:[#allocation2 + $0x50] sm:$0xff]  ;;  %v277_v47 = vld [vmem:[#allocation2 + $0x58] sm:$0xff] }
  0x39   : > { %v380_v16 = vld [vmem:[#allocation2 + $0x80] sm:$0xff]  ;;  %v381_v18 = vld [vmem:[#allocation2 + $0x88] sm:$0xff] }
  0x3a   : > { %286 = vmatpush.msra.mxu0 %v261_v20  ;;  %940 = vmatpush.msra.mxu3 %v261_v20  ;;  %v392_v17 = vld [vmem:[#allocation2 + $0xe0] sm:$0xff]  ;;  %v393_v19 = vld [vmem:[#allocation2 + $0xe8] sm:$0xff]  ;;  %v382_v20 = vld [vmem:[#allocation2 + $0x90] sm:$0xff] }
  0x3c   : > { %287 = vmatpush.msra.mxu0 %v260_v21  ;;  %941 = vmatpush.msra.mxu3 %v260_v21  ;;  %v394_v21 = vld [vmem:[#allocation2 + $0xf0] sm:$0xff] }
  0x3e   : > { %288 = vmatpush.msra.mxu0 %v259_v22  ;;  %942 = vmatpush.msra.mxu3 %v259_v22  ;;  %v383_v22 = vld [vmem:[#allocation2 + $0x98] sm:$0xff] }
  0x40   : > { %289 = vmatpush.msra.mxu0 %v258_v23  ;;  %943 = vmatpush.msra.mxu3 %v258_v23  ;;  %v395_v23 = vld [vmem:[#allocation2 + $0xf8] sm:$0xff] }
  0x42   : > { %290 = vmatpush.msra.mxu0 %v257_v24  ;;  %944 = vmatpush.msra.mxu3 %v257_v24  ;;  %v384_v24 = vld [vmem:[#allocation2 + $0xa0] sm:$0xff] }
  0x44   : > { %291 = vmatpush.msra.mxu0 %v256_v25  ;;  %945 = vmatpush.msra.mxu3 %v256_v25  ;;  %v385_v25 = vld [vmem:[#allocation2 + $0xa8] sm:$0xff] }
  0x46   : > { %292 = vmatpush.msra.mxu0 %v255_v26  ;;  %946 = vmatpush.msra.mxu3 %v255_v26  ;;  %v386_v26 = vld [vmem:[#allocation2 + $0xb0] sm:$0xff] }
  0x48   : > { %293 = vmatpush.msra.mxu0 %v254_v27  ;;  %947 = vmatpush.msra.mxu3 %v254_v27  ;;  %v387_v27 = vld [vmem:[#allocation2 + $0xb8] sm:$0xff] }
  0x4a   : > { %294 = vmatpush.msra.mxu0 %v253_v28  ;;  %948 = vmatpush.msra.mxu3 %v253_v28  ;;  %v388_v28 = vld [vmem:[#allocation2 + $0xc0] sm:$0xff] }
  0x4c   : > { %295 = vmatpush.msra.mxu0 %v252_v29  ;;  %949 = vmatpush.msra.mxu3 %v252_v29  ;;  %v389_v29 = vld [vmem:[#allocation2 + $0xc8] sm:$0xff] }
  0x4e   : > { %296 = vmatpush.msra.mxu0 %v251_v30  ;;  %950 = vmatpush.msra.mxu3 %v251_v30  ;;  %v390_v30 = vld [vmem:[#allocation2 + $0xd0] sm:$0xff] }
  0x50   : > { %297 = vmatpush.msra.mxu0 %v250_v31  ;;  %951 = vmatpush.msra.mxu3 %v250_v31  ;;  %v391_v31 = vld [vmem:[#allocation2 + $0xd8] sm:$0xff] }
  0x51   : > { %298 = vmatmul.f32.vlgmr.msra.gmra.mxu0 %v266_v32  ;;  %334 = vmatmul.f32.vlgmr.msra.gmra.mxu3 %v278_v33 }
  0x59   : > { %301 = vmatmul.f32.gmra.mxu0 %v267_v34  ;;  %337 = vmatmul.f32.gmra.mxu3 %v279_v35 }
  0x61   : > { %304 = vmatmul.f32.gmra.mxu0 %v268_v36  ;;  %340 = vmatmul.f32.gmra.mxu3 %v280_v37 }
  0x69   : > { %307 = vmatmul.f32.gmra.mxu0 %v269_v38  ;;  %343 = vmatmul.f32.gmra.mxu3 %v281_v39 }
  0x71   : > { %310 = vmatmul.f32.gmra.mxu0 %v270_v40 }
  0x79   : > { %313 = vmatmul.f32.gmra.mxu0 %v271_v41 }
  0x81   : > { %316 = vmatmul.f32.gmra.mxu0 %v272_v42 }
  0x89   : > { %319 = vmatmul.f32.gmra.mxu0 %v273_v43 }
  0x91   : > { %322 = vmatmul.f32.gmra.mxu0 %v274_v44 }
  0x99   : > { %325 = vmatmul.f32.gmra.mxu0 %v275_v45 }
  0xa1   : > { %328 = vmatmul.f32.gmra.mxu0 %v276_v46 }
  0xa9   : > { %331 = vmatmul.f32.gmra.mxu0 %v277_v47 }
  0xce   : > { %v1206_v48 = vpop.f32.mrf.mxu0 }
  0xcf   : > { %347 = vst [vmem:[%s1208_s14] sm:$0xff] %v1206_v48  ;;  %v363_v15 = vmax.f32 %v1206_v48, 0.0 }
  0xd4   : > { %v335_v49 = vpop.f32.mrf.mxu3 }
  0xd5   : > { %359 = vst [vmem:[%s1208_s14 + $0x60] sm:$0xff] %v335_v49  ;;  %v375_v60 = vmax.f32 %v335_v49, 0.0 }
  0xd6   : > { %v1213_v50 = vpop.f32.mrf.mxu0 }
  0xd7   : > { %348 = vst [vmem:[%s1208_s14 + $0x8] sm:$0xff] %v1213_v50  ;;  %v364_v14 = vmax.f32 %v1213_v50, 0.0 }
  0xdc   : > { %v338_v51 = vpop.f32.mrf.mxu3 }
  0xdd   : > { %360 = vst [vmem:[%s1208_s14 + $0x68] sm:$0xff] %v338_v51  ;;  %v376_v59 = vmax.f32 %v338_v51, 0.0 }
  0xde   : > { %v1218_v52 = vpop.f32.mrf.mxu0 }
  0xdf   : > { %349 = vst [vmem:[%s1208_s14 + $0x10] sm:$0xff] %v1218_v52  ;;  %v365_v13 = vmax.f32 %v1218_v52, 0.0 }
  0xe4   : > { %v341_v53 = vpop.f32.mrf.mxu3 }
  0xe5   : > { %361 = vst [vmem:[%s1208_s14 + $0x70] sm:$0xff] %v341_v53  ;;  %v377_v57 = vmax.f32 %v341_v53, 0.0 }
  0xe6   : > { %v308_v54 = vpop.f32.mrf.mxu0 }
  0xe7   : > { %350 = vst [vmem:[%s1208_s14 + $0x18] sm:$0xff] %v308_v54  ;;  %v366_v12 = vmax.f32 %v308_v54, 0.0 }
  0xec   : > { %v344_v55 = vpop.f32.mrf.mxu3 }
  0xed   : > { %362 = vst [vmem:[%s1208_s14 + $0x78] sm:$0xff] %v344_v55  ;;  %v378_v56 = vmax.f32 %v344_v55, 0.0 }
  0xee   : > { %v311_v58 = vpop.f32.mrf.mxu0 }
  0xef   : > { %351 = vst [vmem:[%s1208_s14 + $0x20] sm:$0xff] %v311_v58  ;;  %396 = vmatpush.msra.mxu1 %v378_v56  ;;  %952 = vmatpush.msrb.mxu3 %v378_v56  ;;  %v367_v11 = vmax.f32 %v311_v58, 0.0 }
  0xf1   : > { %397 = vmatpush.msra.mxu1 %v377_v57  ;;  %953 = vmatpush.msrb.mxu3 %v377_v57 }
  0xf3   : > { %398 = vmatpush.msra.mxu1 %v376_v59  ;;  %954 = vmatpush.msrb.mxu3 %v376_v59 }
  0xf5   : > { %399 = vmatpush.msra.mxu1 %v375_v60  ;;  %955 = vmatpush.msrb.mxu3 %v375_v60 }
  0xf6   : > { %v314_v61 = vpop.f32.mrf.mxu0 }
  0xf7   : > { %352 = vst [vmem:[%s1208_s14 + $0x28] sm:$0xff] %v314_v61  ;;  %v368_v10 = vmax.f32 %v314_v61, 0.0 }
  0xfe   : > { %v317_v62 = vpop.f32.mrf.mxu0 }
  0xff   : > { %353 = vst [vmem:[%s1208_s14 + $0x30] sm:$0xff] %v317_v62  ;;  %v369_v9 = vmax.f32 %v317_v62, 0.0 }
 0x106   : > { %v320_v63 = vpop.f32.mrf.mxu0 }
 0x107   : > { %354 = vst [vmem:[%s1208_s14 + $0x38] sm:$0xff] %v320_v63  ;;  %v370_v8 = vmax.f32 %v320_v63, 0.0 }
 0x10e   : > { %v323_v0 = vpop.f32.mrf.mxu0 }
 0x10f   : > { %355 = vst [vmem:[%s1208_s14 + $0x40] sm:$0xff] %v323_v0  ;;  %v371_v7 = vmax.f32 %v323_v0, 0.0  ;;  %v495_v0 = vld [vmem:[#allocation2 + $0x100] sm:$0xff] }
 0x116   : > { %v326_v1 = vpop.f32.mrf.mxu0 }
 0x117   : > { %356 = vst [vmem:[%s1208_s14 + $0x48] sm:$0xff] %v326_v1  ;;  %v372_v6 = vmax.f32 %v326_v1, 0.0  ;;  %v496_v1 = vld [vmem:[#allocation2 + $0x108] sm:$0xff] }
 0x11e   : > { %v329_v2 = vpop.f32.mrf.mxu0 }
 0x11f   : > { %357 = vst [vmem:[%s1208_s14 + $0x50] sm:$0xff] %v329_v2  ;;  %v373_v5 = vmax.f32 %v329_v2, 0.0  ;;  %v497_v2 = vld [vmem:[#allocation2 + $0x110] sm:$0xff] }
 0x126   : > { %v332_v3 = vpop.f32.mrf.mxu0 }
 0x127   : > { %358 = vst [vmem:[%s1208_s14 + $0x58] sm:$0xff] %v332_v3  ;;  %v374_v4 = vmax.f32 %v332_v3, 0.0  ;;  %v498_v3 = vld [vmem:[#allocation2 + $0x118] sm:$0xff] }
 0x129   : > { %400 = vmatpush.msra.mxu1 %v374_v4  ;;  %956 = vmatpush.msrb.mxu3 %v374_v4  ;;  %v499_v4 = vld [vmem:[#allocation2 + $0x120] sm:$0xff] }
 0x12b   : > { %401 = vmatpush.msra.mxu1 %v373_v5  ;;  %957 = vmatpush.msrb.mxu3 %v373_v5  ;;  %v507_v5 = vld [vmem:[#allocation2 + $0x160] sm:$0xff] }
 0x12d   : > { %402 = vmatpush.msra.mxu1 %v372_v6  ;;  %958 = vmatpush.msrb.mxu3 %v372_v6  ;;  %v500_v6 = vld [vmem:[#allocation2 + $0x128] sm:$0xff] }
 0x12f   : > { %403 = vmatpush.msra.mxu1 %v371_v7  ;;  %959 = vmatpush.msrb.mxu3 %v371_v7  ;;  %v508_v7 = vld [vmem:[#allocation2 + $0x168] sm:$0xff] }
 0x131   : > { %404 = vmatpush.msra.mxu1 %v370_v8  ;;  %960 = vmatpush.msrb.mxu3 %v370_v8  ;;  %v501_v8 = vld [vmem:[#allocation2 + $0x130] sm:$0xff] }
 0x133   : > { %405 = vmatpush.msra.mxu1 %v369_v9  ;;  %961 = vmatpush.msrb.mxu3 %v369_v9  ;;  %v509_v9 = vld [vmem:[#allocation2 + $0x170] sm:$0xff] }
 0x135   : > { %406 = vmatpush.msra.mxu1 %v368_v10  ;;  %962 = vmatpush.msrb.mxu3 %v368_v10  ;;  %v502_v10 = vld [vmem:[#allocation2 + $0x138] sm:$0xff] }
 0x137   : > { %407 = vmatpush.msra.mxu1 %v367_v11  ;;  %963 = vmatpush.msrb.mxu3 %v367_v11  ;;  %v510_v11 = vld [vmem:[#allocation2 + $0x178] sm:$0xff] }
 0x139   : > { %408 = vmatpush.msra.mxu1 %v366_v12  ;;  %964 = vmatpush.msrb.mxu3 %v366_v12  ;;  %v503_v12 = vld [vmem:[#allocation2 + $0x140] sm:$0xff] }
 0x13b   : > { %409 = vmatpush.msra.mxu1 %v365_v13  ;;  %965 = vmatpush.msrb.mxu3 %v365_v13  ;;  %v504_v13 = vld [vmem:[#allocation2 + $0x148] sm:$0xff] }
 0x13d   : > { %410 = vmatpush.msra.mxu1 %v364_v14  ;;  %966 = vmatpush.msrb.mxu3 %v364_v14  ;;  %v505_v14 = vld [vmem:[#allocation2 + $0x150] sm:$0xff] }
 0x13f   : > { %411 = vmatpush.msra.mxu1 %v363_v15  ;;  %967 = vmatpush.msrb.mxu3 %v363_v15  ;;  %v506_v15 = vld [vmem:[#allocation2 + $0x158] sm:$0xff] }
 0x140   : > { %412 = vmatmul.f32.vlgmr.msra.gmra.mxu1 %v380_v16  ;;  %448 = vmatmul.f32.vlgmr.msrb.gmra.mxu3 %v392_v17 }
 0x148   : > { %415 = vmatmul.f32.gmra.mxu1 %v381_v18  ;;  %451 = vmatmul.f32.gmra.mxu3 %v393_v19 }
 0x150   : > { %418 = vmatmul.f32.gmra.mxu1 %v382_v20  ;;  %454 = vmatmul.f32.gmra.mxu3 %v394_v21 }
 0x158   : > { %421 = vmatmul.f32.gmra.mxu1 %v383_v22  ;;  %457 = vmatmul.f32.gmra.mxu3 %v395_v23 }
 0x160   : > { %424 = vmatmul.f32.gmra.mxu1 %v384_v24 }
 0x168   : > { %427 = vmatmul.f32.gmra.mxu1 %v385_v25 }
 0x170   : > { %430 = vmatmul.f32.gmra.mxu1 %v386_v26 }
 0x178   : > { %433 = vmatmul.f32.gmra.mxu1 %v387_v27 }
 0x180   : > { %436 = vmatmul.f32.gmra.mxu1 %v388_v28 }
 0x188   : > { %439 = vmatmul.f32.gmra.mxu1 %v389_v29 }
 0x190   : > { %442 = vmatmul.f32.gmra.mxu1 %v390_v30 }
 0x198   : > { %445 = vmatmul.f32.gmra.mxu1 %v391_v31 }
 0x1bd   : > { %v1236_v32 = vpop.f32.mrf.mxu1 }
 0x1be   : > { %901 = vst [vmem:[%s1208_s14 + $0x80] sm:$0xff] %v1236_v32  ;;  %v478_v63 = vmax.f32 %v1236_v32, 0.0  ;;  %v724_v32 = vld [vmem:[%s1208_s14] sm:$0xff] (%p1133_p5) }
 0x1bf   : > { %725 = vst [vmem:[%s1288_s19] sm:$0xff] (%p1133_p5), %v724_v32 }
 0x1c3   : > { %v449_v33 = vpop.f32.mrf.mxu3 }
 0x1c4   : > { %913 = vst [vmem:[%s1208_s14 + $0xe0] sm:$0xff] %v449_v33  ;;  %v490_v44 = vmax.f32 %v449_v33, 0.0  ;;  %v726_v33 = vld [vmem:[%s1208_s14 + $0x8] sm:$0xff] (%p1133_p5) }
 0x1c5   : > { %v1241_v34 = vpop.f32.mrf.mxu1  ;;  %727 = vst [vmem:[%s1288_s19 + $0x10] sm:$0xff] (%p1133_p5), %v726_v33 }
 0x1c6   : > { %902 = vst [vmem:[%s1208_s14 + $0x88] sm:$0xff] %v1241_v34  ;;  %v479_v62 = vmax.f32 %v1241_v34, 0.0  ;;  %v728_v34 = vld [vmem:[%s1208_s14 + $0x10] sm:$0xff] (%p1133_p5) }
 0x1c7   : > { %729 = vst [vmem:[%s1288_s19 + $0x20] sm:$0xff] (%p1133_p5), %v728_v34 }
 0x1cb   : > { %v452_v35 = vpop.f32.mrf.mxu3 }
 0x1cc   : > { %914 = vst [vmem:[%s1208_s14 + $0xe8] sm:$0xff] %v452_v35  ;;  %v491_v43 = vmax.f32 %v452_v35, 0.0  ;;  %v730_v35 = vld [vmem:[%s1208_s14 + $0x18] sm:$0xff] (%p1133_p5) }
 0x1cd   : > { %v1246_v36 = vpop.f32.mrf.mxu1  ;;  %731 = vst [vmem:[%s1288_s19 + $0x30] sm:$0xff] (%p1133_p5), %v730_v35 }
 0x1ce   : > { %903 = vst [vmem:[%s1208_s14 + $0x90] sm:$0xff] %v1246_v36  ;;  %v480_v61 = vmax.f32 %v1246_v36, 0.0  ;;  %v732_v36 = vld [vmem:[%s1208_s14 + $0x20] sm:$0xff] (%p1133_p5) }
 0x1cf   : > { %733 = vst [vmem:[%s1288_s19 + $0x40] sm:$0xff] (%p1133_p5), %v732_v36 }
 0x1d3   : > { %v455_v37 = vpop.f32.mrf.mxu3 }
 0x1d4   : > { %915 = vst [vmem:[%s1208_s14 + $0xf0] sm:$0xff] %v455_v37  ;;  %v492_v41 = vmax.f32 %v455_v37, 0.0  ;;  %v734_v37 = vld [vmem:[%s1208_s14 + $0x28] sm:$0xff] (%p1133_p5) }
 0x1d5   : > { %v422_v38 = vpop.f32.mrf.mxu1  ;;  %735 = vst [vmem:[%s1288_s19 + $0x50] sm:$0xff] (%p1133_p5), %v734_v37 }
 0x1d6   : > { %904 = vst [vmem:[%s1208_s14 + $0x98] sm:$0xff] %v422_v38  ;;  %v481_v60 = vmax.f32 %v422_v38, 0.0  ;;  %v736_v38 = vld [vmem:[%s1208_s14 + $0x30] sm:$0xff] (%p1133_p5) }
 0x1d7   : > { %737 = vst [vmem:[%s1288_s19 + $0x60] sm:$0xff] (%p1133_p5), %v736_v38 }
 0x1db   : > { %v458_v39 = vpop.f32.mrf.mxu3 }
 0x1dc   : > { %916 = vst [vmem:[%s1208_s14 + $0xf8] sm:$0xff] %v458_v39  ;;  %v493_v40 = vmax.f32 %v458_v39, 0.0  ;;  %v738_v39 = vld [vmem:[%s1208_s14 + $0x38] sm:$0xff] (%p1133_p5) }
 0x1dd   : > { %v425_v42 = vpop.f32.mrf.mxu1  ;;  %739 = vst [vmem:[%s1288_s19 + $0x70] sm:$0xff] (%p1133_p5), %v738_v39 }
 0x1de   : > { %905 = vst [vmem:[%s1208_s14 + $0xa0] sm:$0xff] %v425_v42  ;;  %511 = vmatpush.msra.mxu2 %v493_v40  ;;  %968 = vmatpush.msra.mxu3 %v493_v40  ;;  %v482_v59 = vmax.f32 %v425_v42, 0.0  ;;  %v740_v40 = vld [vmem:[%s1208_s14 + $0x40] sm:$0xff] (%p1133_p5)  ;;  %v744_v42 = vld [vmem:[%s1208_s14 + $0x50] sm:$0xff] (%p1133_p5) }
 0x1df   : > { %741 = vst [vmem:[%s1288_s19 + $0x80] sm:$0xff] (%p1133_p5), %v740_v40 }
 0x1e0   : > { %512 = vmatpush.msra.mxu2 %v492_v41  ;;  %969 = vmatpush.msra.mxu3 %v492_v41  ;;  %v742_v41 = vld [vmem:[%s1208_s14 + $0x48] sm:$0xff] (%p1133_p5)  ;;  %745 = vst [vmem:[%s1288_s19 + $0xa0] sm:$0xff] (%p1133_p5), %v744_v42 }
 0x1e1   : > { %743 = vst [vmem:[%s1288_s19 + $0x90] sm:$0xff] (%p1133_p5), %v742_v41 }
 0x1e2   : > { %513 = vmatpush.msra.mxu2 %v491_v43  ;;  %970 = vmatpush.msra.mxu3 %v491_v43  ;;  %v746_v43 = vld [vmem:[%s1208_s14 + $0x58] sm:$0xff] (%p1133_p5) }
 0x1e3   : > { %747 = vst [vmem:[%s1288_s19 + $0xb0] sm:$0xff] (%p1133_p5), %v746_v43 }
 0x1e4   : > { %514 = vmatpush.msra.mxu2 %v490_v44  ;;  %971 = vmatpush.msra.mxu3 %v490_v44  ;;  %v748_v44 = vld [vmem:[%s1208_s14 + $0x60] sm:$0xff] (%p1133_p5) }
 0x1e5   : > { %v428_v45 = vpop.f32.mrf.mxu1  ;;  %749 = vst [vmem:[%s1288_s19 + $0xc0] sm:$0xff] (%p1133_p5), %v748_v44 }
 0x1e6   : > { %906 = vst [vmem:[%s1208_s14 + $0xa8] sm:$0xff] %v428_v45  ;;  %v483_v58 = vmax.f32 %v428_v45, 0.0  ;;  %v750_v45 = vld [vmem:[%s1208_s14 + $0x68] sm:$0xff] (%p1133_p5) }
 0x1e7   : > { %751 = vst [vmem:[%s1288_s19 + $0xd0] sm:$0xff] (%p1133_p5), %v750_v45 }
 0x1ed   : > { %v431_v46 = vpop.f32.mrf.mxu1 }
 0x1ee   : > { %907 = vst [vmem:[%s1208_s14 + $0xb0] sm:$0xff] %v431_v46  ;;  %v484_v57 = vmax.f32 %v431_v46, 0.0  ;;  %v752_v46 = vld [vmem:[%s1208_s14 + $0x70] sm:$0xff] (%p1133_p5) }
 0x1ef   : > { %753 = vst [vmem:[%s1288_s19 + $0xe0] sm:$0xff] (%p1133_p5), %v752_v46 }
 0x1f5   : > { %v434_v47 = vpop.f32.mrf.mxu1 }
 0x1f6   : > { %908 = vst [vmem:[%s1208_s14 + $0xb8] sm:$0xff] %v434_v47  ;;  %v485_v56 = vmax.f32 %v434_v47, 0.0  ;;  %v754_v47 = vld [vmem:[%s1208_s14 + $0x78] sm:$0xff] (%p1133_p5) }
 0x1f7   : > { %755 = vst [vmem:[%s1288_s19 + $0xf0] sm:$0xff] (%p1133_p5), %v754_v47 }
 0x1fd   : > { %v437_v48 = vpop.f32.mrf.mxu1 }
 0x1fe   : > { %909 = vst [vmem:[%s1208_s14 + $0xc0] sm:$0xff] %v437_v48  ;;  %v486_v55 = vmax.f32 %v437_v48, 0.0  ;;  %v756_v48 = vld [vmem:[%s1208_s14 + $0x80] sm:$0xff] (%p1133_p5) }
 0x1ff   : > { %757 = vst [vmem:[%s1288_s19 + $0x100] sm:$0xff] (%p1133_p5), %v756_v48 }
 0x205   : > { %v440_v49 = vpop.f32.mrf.mxu1 }
 0x206   : > { %910 = vst [vmem:[%s1208_s14 + $0xc8] sm:$0xff] %v440_v49  ;;  %v487_v54 = vmax.f32 %v440_v49, 0.0  ;;  %v758_v49 = vld [vmem:[%s1208_s14 + $0x88] sm:$0xff] (%p1133_p5) }
 0x207   : > { %759 = vst [vmem:[%s1288_s19 + $0x110] sm:$0xff] (%p1133_p5), %v758_v49 }
 0x20d   : > { %v443_v50 = vpop.f32.mrf.mxu1 }
 0x20e   : > { %911 = vst [vmem:[%s1208_s14 + $0xd0] sm:$0xff] %v443_v50  ;;  %v488_v53 = vmax.f32 %v443_v50, 0.0  ;;  %v760_v50 = vld [vmem:[%s1208_s14 + $0x90] sm:$0xff] (%p1133_p5) }
 0x20f   : > { %761 = vst [vmem:[%s1288_s19 + $0x120] sm:$0xff] (%p1133_p5), %v760_v50 }
 0x215   : > { %v446_v51 = vpop.f32.mrf.mxu1 }
 0x216   : > { %912 = vst [vmem:[%s1208_s14 + $0xd8] sm:$0xff] %v446_v51  ;;  %v489_v52 = vmax.f32 %v446_v51, 0.0  ;;  %v762_v51 = vld [vmem:[%s1208_s14 + $0x98] sm:$0xff] (%p1133_p5) }
 0x217   : > { %763 = vst [vmem:[%s1288_s19 + $0x130] sm:$0xff] (%p1133_p5), %v762_v51 }
 0x218   : > { %515 = vmatpush.msra.mxu2 %v489_v52  ;;  %972 = vmatpush.msra.mxu3 %v489_v52  ;;  %v764_v52 = vld [vmem:[%s1208_s14 + $0xa0] sm:$0xff] (%p1133_p5) }
 0x219   : > { %765 = vst [vmem:[%s1288_s19 + $0x140] sm:$0xff] (%p1133_p5), %v764_v52 }
 0x21a   : > { %516 = vmatpush.msra.mxu2 %v488_v53  ;;  %973 = vmatpush.msra.mxu3 %v488_v53  ;;  %v766_v53 = vld [vmem:[%s1208_s14 + $0xa8] sm:$0xff] (%p1133_p5) }
 0x21b   : > { %767 = vst [vmem:[%s1288_s19 + $0x150] sm:$0xff] (%p1133_p5), %v766_v53 }
 0x21c   : > { %517 = vmatpush.msra.mxu2 %v487_v54  ;;  %974 = vmatpush.msra.mxu3 %v487_v54  ;;  %v768_v54 = vld [vmem:[%s1208_s14 + $0xb0] sm:$0xff] (%p1133_p5) }
 0x21d   : > { %769 = vst [vmem:[%s1288_s19 + $0x160] sm:$0xff] (%p1133_p5), %v768_v54 }
 0x21e   : > { %518 = vmatpush.msra.mxu2 %v486_v55  ;;  %975 = vmatpush.msra.mxu3 %v486_v55  ;;  %v770_v55 = vld [vmem:[%s1208_s14 + $0xb8] sm:$0xff] (%p1133_p5) }
 0x21f   : > { %771 = vst [vmem:[%s1288_s19 + $0x170] sm:$0xff] (%p1133_p5), %v770_v55 }
 0x220   : > { %519 = vmatpush.msra.mxu2 %v485_v56  ;;  %976 = vmatpush.msra.mxu3 %v485_v56  ;;  %v772_v56 = vld [vmem:[%s1208_s14 + $0xc0] sm:$0xff] (%p1133_p5) }
 0x221   : > { %773 = vst [vmem:[%s1288_s19 + $0x180] sm:$0xff] (%p1133_p5), %v772_v56 }
 0x222   : > { %520 = vmatpush.msra.mxu2 %v484_v57  ;;  %977 = vmatpush.msra.mxu3 %v484_v57  ;;  %v774_v57 = vld [vmem:[%s1208_s14 + $0xc8] sm:$0xff] (%p1133_p5) }
 0x223   : > { %775 = vst [vmem:[%s1288_s19 + $0x190] sm:$0xff] (%p1133_p5), %v774_v57 }
 0x224   : > { %521 = vmatpush.msra.mxu2 %v483_v58  ;;  %978 = vmatpush.msra.mxu3 %v483_v58  ;;  %v776_v58 = vld [vmem:[%s1208_s14 + $0xd0] sm:$0xff] (%p1133_p5) }
 0x225   : > { %777 = vst [vmem:[%s1288_s19 + $0x1a0] sm:$0xff] (%p1133_p5), %v776_v58 }
 0x226   : > { %522 = vmatpush.msra.mxu2 %v482_v59  ;;  %979 = vmatpush.msra.mxu3 %v482_v59  ;;  %v778_v59 = vld [vmem:[%s1208_s14 + $0xd8] sm:$0xff] (%p1133_p5) }
 0x227   : > { %779 = vst [vmem:[%s1288_s19 + $0x1b0] sm:$0xff] (%p1133_p5), %v778_v59 }
 0x228   : > { %523 = vmatpush.msra.mxu2 %v481_v60  ;;  %980 = vmatpush.msra.mxu3 %v481_v60  ;;  %v780_v60 = vld [vmem:[%s1208_s14 + $0xe0] sm:$0xff] (%p1133_p5) }
 0x229   : > { %781 = vst [vmem:[%s1288_s19 + $0x1c0] sm:$0xff] (%p1133_p5), %v780_v60 }
 0x22a   : > { %524 = vmatpush.msra.mxu2 %v480_v61  ;;  %981 = vmatpush.msra.mxu3 %v480_v61  ;;  %v782_v61 = vld [vmem:[%s1208_s14 + $0xe8] sm:$0xff] (%p1133_p5) }
 0x22b   : > { %783 = vst [vmem:[%s1288_s19 + $0x1d0] sm:$0xff] (%p1133_p5), %v782_v61 }
 0x22c   : > { %525 = vmatpush.msra.mxu2 %v479_v62  ;;  %982 = vmatpush.msra.mxu3 %v479_v62  ;;  %v784_v62 = vld [vmem:[%s1208_s14 + $0xf0] sm:$0xff] (%p1133_p5) }
 0x22d   : > { %785 = vst [vmem:[%s1288_s19 + $0x1e0] sm:$0xff] (%p1133_p5), %v784_v62 }
 0x22e   : > { %526 = vmatpush.msra.mxu2 %v478_v63  ;;  %983 = vmatpush.msra.mxu3 %v478_v63  ;;  %v786_v63 = vld [vmem:[%s1208_s14 + $0xf8] sm:$0xff] (%p1133_p5) }
 0x22f   : > { %527 = vmatmul.f32.vlgmr.msra.gmra.mxu2 %v495_v0  ;;  %563 = vmatmul.f32.vlgmr.msra.gmra.mxu3 %v507_v5  ;;  %787 = vst [vmem:[%s1288_s19 + $0x1f0] sm:$0xff] (%p1133_p5), %v786_v63 }
 0x237   : > { %530 = vmatmul.f32.gmra.mxu2 %v496_v1  ;;  %566 = vmatmul.f32.gmra.mxu3 %v508_v7 }
 0x23f   : > { %533 = vmatmul.f32.gmra.mxu2 %v497_v2  ;;  %569 = vmatmul.f32.gmra.mxu3 %v509_v9 }
 0x247   : > { %536 = vmatmul.f32.gmra.mxu2 %v498_v3  ;;  %572 = vmatmul.f32.gmra.mxu3 %v510_v11 }
 0x24f   : > { %539 = vmatmul.f32.gmra.mxu2 %v499_v4 }
 0x257   : > { %542 = vmatmul.f32.gmra.mxu2 %v500_v6 }
 0x25f   : > { %545 = vmatmul.f32.gmra.mxu2 %v501_v8 }
 0x267   : > { %548 = vmatmul.f32.gmra.mxu2 %v502_v10 }
 0x26f   : > { %551 = vmatmul.f32.gmra.mxu2 %v503_v12 }
 0x277   : > { %554 = vmatmul.f32.gmra.mxu2 %v504_v13 }
 0x27f   : > { %557 = vmatmul.f32.gmra.mxu2 %v505_v14 }
 0x287   : > { %560 = vmatmul.f32.gmra.mxu2 %v506_v15 }
 0x2b2   : > { %v528_v16 = vpop.f32.mrf.mxu2  ;;  %v564_v21 = vpop.f32.mrf.mxu3 }
 0x2b3   : > { %917 = vst [vmem:[%s1208_s14 + $0x100] sm:$0xff] %v528_v16 }
 0x2b4   : > { %929 = vst [vmem:[%s1208_s14 + $0x160] sm:$0xff] %v564_v21 }
 0x2ba   : > { %v531_v17 = vpop.f32.mrf.mxu2  ;;  %v567_v23 = vpop.f32.mrf.mxu3  ;;  %v788_v0 = vld [vmem:[%s1208_s14 + $0x100] sm:$0xff] (%p1133_p5) }
 0x2bb   : > { %918 = vst [vmem:[%s1208_s14 + $0x108] sm:$0xff] %v531_v17  ;;  %v812_v12 = vld [vmem:[%s1208_s14 + $0x160] sm:$0xff] (%p1133_p5) }
 0x2bc   : > { %930 = vst [vmem:[%s1208_s14 + $0x168] sm:$0xff] %v567_v23 }
 0x2bd   : > { %789 = vst [vmem:[%s1288_s19 + $0x200] sm:$0xff] (%p1133_p5), %v788_v0 }
 0x2be   : > { %813 = vst [vmem:[%s1288_s19 + $0x2c0] sm:$0xff] (%p1133_p5), %v812_v12 }
 0x2c2   : > { %v534_v18 = vpop.f32.mrf.mxu2  ;;  %v570_v25 = vpop.f32.mrf.mxu3  ;;  %v790_v1 = vld [vmem:[%s1208_s14 + $0x108] sm:$0xff] (%p1133_p5) }
 0x2c3   : > { %919 = vst [vmem:[%s1208_s14 + $0x110] sm:$0xff] %v534_v18  ;;  %v814_v13 = vld [vmem:[%s1208_s14 + $0x168] sm:$0xff] (%p1133_p5) }
 0x2c4   : > { %931 = vst [vmem:[%s1208_s14 + $0x170] sm:$0xff] %v570_v25 }
 0x2c5   : > { %791 = vst [vmem:[%s1288_s19 + $0x210] sm:$0xff] (%p1133_p5), %v790_v1 }
 0x2c6   : > { %815 = vst [vmem:[%s1288_s19 + $0x2d0] sm:$0xff] (%p1133_p5), %v814_v13 }
 0x2ca   : > { %v537_v19 = vpop.f32.mrf.mxu2  ;;  %v573_v27 = vpop.f32.mrf.mxu3  ;;  %v792_v2 = vld [vmem:[%s1208_s14 + $0x110] sm:$0xff] (%p1133_p5) }
 0x2cb   : > { %920 = vst [vmem:[%s1208_s14 + $0x118] sm:$0xff] %v537_v19  ;;  %v816_v14 = vld [vmem:[%s1208_s14 + $0x170] sm:$0xff] (%p1133_p5) }
 0x2cc   : > { %932 = vst [vmem:[%s1208_s14 + $0x178] sm:$0xff] %v573_v27 }
 0x2cd   : > { %793 = vst [vmem:[%s1288_s19 + $0x220] sm:$0xff] (%p1133_p5), %v792_v2 }
 0x2ce   : > { %817 = vst [vmem:[%s1288_s19 + $0x2e0] sm:$0xff] (%p1133_p5), %v816_v14 }
 0x2d2   : > { %v540_v20 = vpop.f32.mrf.mxu2  ;;  %v794_v3 = vld [vmem:[%s1208_s14 + $0x118] sm:$0xff] (%p1133_p5) }
 0x2d3   : > { %921 = vst [vmem:[%s1208_s14 + $0x120] sm:$0xff] %v540_v20  ;;  %v818_v15 = vld [vmem:[%s1208_s14 + $0x178] sm:$0xff] (%p1133_p5) }
 0x2d4   : > { %795 = vst [vmem:[%s1288_s19 + $0x230] sm:$0xff] (%p1133_p5), %v794_v3 }
 0x2d5   : > { %819 = vst [vmem:[%s1288_s19 + $0x2f0] sm:$0xff] (%p1133_p5), %v818_v15 }
 0x2da   : > { %v543_v22 = vpop.f32.mrf.mxu2  ;;  %v796_v4 = vld [vmem:[%s1208_s14 + $0x120] sm:$0xff] (%p1133_p5) }
 0x2db   : > { %922 = vst [vmem:[%s1208_s14 + $0x128] sm:$0xff] %v543_v22 }
 0x2dc   : > { %797 = vst [vmem:[%s1288_s19 + $0x240] sm:$0xff] (%p1133_p5), %v796_v4 }
 0x2e2   : > { %v546_v24 = vpop.f32.mrf.mxu2  ;;  %v798_v5 = vld [vmem:[%s1208_s14 + $0x128] sm:$0xff] (%p1133_p5) }
 0x2e3   : > { %923 = vst [vmem:[%s1208_s14 + $0x130] sm:$0xff] %v546_v24 }
 0x2e4   : > { %799 = vst [vmem:[%s1288_s19 + $0x250] sm:$0xff] (%p1133_p5), %v798_v5 }
 0x2ea   : > { %v549_v26 = vpop.f32.mrf.mxu2  ;;  %v800_v6 = vld [vmem:[%s1208_s14 + $0x130] sm:$0xff] (%p1133_p5) }
 0x2eb   : > { %924 = vst [vmem:[%s1208_s14 + $0x138] sm:$0xff] %v549_v26 }
 0x2ec   : > { %801 = vst [vmem:[%s1288_s19 + $0x260] sm:$0xff] (%p1133_p5), %v800_v6 }
 0x2f2   : > { %v552_v28 = vpop.f32.mrf.mxu2  ;;  %v802_v7 = vld [vmem:[%s1208_s14 + $0x138] sm:$0xff] (%p1133_p5) }
 0x2f3   : > { %925 = vst [vmem:[%s1208_s14 + $0x140] sm:$0xff] %v552_v28 }
 0x2f4   : > { %803 = vst [vmem:[%s1288_s19 + $0x270] sm:$0xff] (%p1133_p5), %v802_v7 }
 0x2fa   : > { %v555_v29 = vpop.f32.mrf.mxu2  ;;  %v804_v8 = vld [vmem:[%s1208_s14 + $0x140] sm:$0xff] (%p1133_p5) }
 0x2fb   : > { %926 = vst [vmem:[%s1208_s14 + $0x148] sm:$0xff] %v555_v29 }
 0x2fc   : > { %805 = vst [vmem:[%s1288_s19 + $0x280] sm:$0xff] (%p1133_p5), %v804_v8 }
 0x302   : > { %v558_v30 = vpop.f32.mrf.mxu2  ;;  %v806_v9 = vld [vmem:[%s1208_s14 + $0x148] sm:$0xff] (%p1133_p5) }
 0x303   : > { %927 = vst [vmem:[%s1208_s14 + $0x150] sm:$0xff] %v558_v30 }
 0x304   : > { %807 = vst [vmem:[%s1288_s19 + $0x290] sm:$0xff] (%p1133_p5), %v806_v9 }
 0x307   : > { %599 = sbr.rel (!%p1133_p5) target bundleno = 788 (0x314), region = 74 }
 0x30a   : > { %v561_v31 = vpop.f32.mrf.mxu2  ;;  %v808_v10 = vld [vmem:[%s1208_s14 + $0x150] sm:$0xff] (%p1133_p5) }
 0x30b   : > { %928 = vst [vmem:[%s1208_s14 + $0x158] sm:$0xff] %v561_v31 }
 0x30c   : > { %809 = vst [vmem:[%s1288_s19 + $0x2a0] sm:$0xff] %v808_v10 }
 0x312   : > { %v810_v11 = vld [vmem:[%s1208_s14 + $0x158] sm:$0xff] }
 0x313   : > { %811 = vst [vmem:[%s1288_s19 + $0x2b0] sm:$0xff] %v810_v11 }
 0x314 PF: > { %p10_p13 = scmp.ge.s32.totalorder %s1117_s13, 4   ;;  %s1400_s9 = smov %s1074_s10 }
 0x315   : > { %s1401_s10 = smov %s1127_s16  ;;  %s1402_s11 = smov %s1117_s13 }
 0x316   :  { %12 = sbr.rel (!%p10_p13) target bundleno = 2 (0x2), region = 148 }
 0x31b   :  { %835 = vsyncpa [#allocation3], 1 }
 0x31c   :  { %837 = vsyncpa [#allocation3 + $0x1], 1 }

</bundles_post_ra>
